<compile_context>
chip_gen: v7x
topology: tpu7x:2x2x1
jax: 0.10.0
libtpu: 0.0.40
codegen_flags: <defaults>
</compile_context>

<pallas_src>
import jax
import jax.numpy as jnp
from jax.experimental import pallas as pl
from jax.experimental.pallas import tpu as pltpu


def _round_up(n, m):
    return ((n + m - 1) // m) * m


def _pick_block_b(B, cap=512):
    """Batch-row block: full B if small, else the largest divisor of B that is
    a multiple of 8 (sublane-legal) and <= cap; falls back to full B."""
    if B <= cap:
        return B
    for d in range(min(B, cap), 7, -1):
        if B % d == 0 and d % 8 == 0:
            return d
    return B


def _pick_block_f(F, cap=16):
    """Gene block: largest divisor of F <= cap (leading dim, no tiling constraint)."""
    cap = max(1, min(F, cap))
    for d in range(cap, 0, -1):
        if F % d == 0:
            return d
    return 1


def _mlp_clf_kernel(x_ref, w0_ref, b0_ref, w1_ref, b1_ref, wd_ref, bd_ref,
                    out_ref, acc_ref):
    """One grid step = one (block_f genes) x (block_b rows) slab.

    x_ref : (block_f, block_b, D) bf16        w0_ref: (D, H) bf16  b0_ref: (1, H) f32
    w1_ref: (H, H) bf16  b1_ref: (1, H) f32   wd_ref: (block_f, H, Cpad) bf16
    bd_ref: (1, Cpad) f32                     out_ref/acc_ref: (block_b, Cpad) f32
    """
    f_step = pl.program_id(1)

    @pl.when(f_step == 0)
    def _():
        acc_ref[...] = jnp.zeros_like(acc_ref)

    block_f = x_ref.shape[0]

    # Hoist the resident weight loads out of the unrolled gene loop.
    w0 = w0_ref[...]
    b0 = b0_ref[...]
    w1 = w1_ref[...]
    b1 = b1_ref[...]

    acc = acc_ref[...]
    # Static (unrolled) loop over genes in this slab: every operand stays 2-D
    # and lane-aligned -- no (B*F, H) -> (B, F*H) lane-crossing reshape.
    for f in range(block_f):
        xf = x_ref[f]                                             # (block_b, D)
        h = jnp.dot(xf, w0, preferred_element_type=jnp.float32)
        h = jnp.maximum(h + b0, 0.0).astype(jnp.bfloat16)
        h = jnp.dot(h, w1, preferred_element_type=jnp.float32)
        h = jnp.maximum(h + b1, 0.0).astype(jnp.bfloat16)
        acc = acc + jnp.dot(h, wd_ref[f], preferred_element_type=jnp.float32)
    acc_ref[...] = acc

    @pl.when(f_step == pl.num_programs(1) - 1)
    def _():
        out_ref[...] = (acc_ref[...] + bd_ref[...]).astype(out_ref.dtype)


def mlp_clf_forward(x, params, *, block_b=None, block_f=None):
    """x: (B, n_features, d_model) float32. params: dict of transposed weights."""
    B, F, D = x.shape
    H = params["w0"].shape[1]
    C = params["wd"].shape[1]
    assert params["wd"].shape[0] == F * H

    Cpad = _round_up(C, 128)          # lane-dense output / decision weight
    if block_b is None:
        block_b = _pick_block_b(B)
    if block_f is None:
        block_f = _pick_block_f(F)
    assert B % block_b == 0 and F % block_f == 0

    # Wrapper-side layout plumbing (done by XLA outside the kernel).
    x_t = jnp.transpose(x, (1, 0, 2)).astype(jnp.bfloat16)        # (F, B, D)
    w0 = params["w0"].astype(jnp.bfloat16)                        # (D, H)
    w1 = params["w1"].astype(jnp.bfloat16)                        # (H, H)
    b0 = params["b0"].astype(jnp.float32)                         # (1, H)
    b1 = params["b1"].astype(jnp.float32)                         # (1, H)
    wd = params["wd"].reshape(F, H, C)                            # (F, H, C)
    wd = jnp.pad(wd, ((0, 0), (0, 0), (0, Cpad - C))).astype(jnp.bfloat16)
    bd = jnp.pad(params["bd"], ((0, 0), (0, Cpad - C))).astype(jnp.float32)

    const2 = lambda i, f: (0, 0)

    out_padded = pl.pallas_call(
        _mlp_clf_kernel,
        out_shape=jax.ShapeDtypeStruct((B, Cpad), jnp.float32),
        grid=(B // block_b, F // block_f),
        in_specs=[
            pl.BlockSpec((block_f, block_b, D), lambda i, f: (f, i, 0)),  # x
            pl.BlockSpec((D, H), const2),                                 # w0
            pl.BlockSpec((1, H), const2),                                 # b0
            pl.BlockSpec((H, H), const2),                                 # w1
            pl.BlockSpec((1, H), const2),                                 # b1
            pl.BlockSpec((block_f, H, Cpad), lambda i, f: (f, 0, 0)),     # wd
            pl.BlockSpec((1, Cpad), const2),                              # bd
        ],
        out_specs=pl.BlockSpec((block_b, Cpad), lambda i, f: (i, 0)),
        scratch_shapes=[pltpu.VMEM((block_b, Cpad), jnp.float32)],
        compiler_params=pltpu.CompilerParams(
            dimension_semantics=("parallel", "arbitrary")),
    )(x_t, w0, b0, w1, b1, wd, bd)

    return out_padded[:, :C]


def init_params(key, n_features, d_model, n_hidden, n_class):
    """Deterministic synthetic init (uniform, nn.Linear-like scale).
    Weights are stored transposed: (in_features, out_features)."""
    ks = jax.random.split(key, 6)

    def lin(kw, kb, fan_in, fan_out):
        bound = 1.0 / jnp.sqrt(jnp.float32(fan_in))
        w = jax.random.uniform(kw, (fan_in, fan_out), jnp.float32, -bound, bound)
        b = jax.random.uniform(kb, (1, fan_out), jnp.float32, -bound, bound)
        return w, b

    w0, b0 = lin(ks[0], ks[1], d_model, n_hidden)
    w1, b1 = lin(ks[2], ks[3], n_hidden, n_hidden)
    wd, bd = lin(ks[4], ks[5], n_features * n_hidden, n_class)
    return {"w0": w0, "b0": b0, "w1": w1, "b1": b1, "wd": wd, "bd": bd}


def reference_forward(x, p):
    """Pure-JAX reference using the same bf16-in / f32-accumulate recipe."""
    B, F, D = x.shape
    H = p["w0"].shape[1]
    xb = x.astype(jnp.bfloat16).reshape(B * F, D)
    h = jnp.dot(xb, p["w0"].astype(jnp.bfloat16),
                preferred_element_type=jnp.float32) + p["b0"]
    h = jnp.maximum(h, 0.0).astype(jnp.bfloat16)
    h = jnp.dot(h, p["w1"].astype(jnp.bfloat16),
                preferred_element_type=jnp.float32) + p["b1"]
    h = jnp.maximum(h, 0.0).astype(jnp.bfloat16)
    h = h.reshape(B, F * H)
    return jnp.dot(h, p["wd"].astype(jnp.bfloat16),
                   preferred_element_type=jnp.float32) + p["bd"]


if __name__ == "__main__":
    # Small, module-consistent shapes: n_layer_set=2 (default 'CLF' path)
    B, n_features, d_model, n_hidden, n_class = 2, 8, 32, 16, 10

    key = jax.random.PRNGKey(0)
    k_x, k_p = jax.random.split(key)
    x = jax.random.normal(k_x, (B, n_features, d_model), jnp.float32)
    params = init_params(k_p, n_features, d_model, n_hidden, n_class)

    out = mlp_clf_forward(x, params)
    out = jax.block_until_ready(out)

    ref = reference_forward(x, params)
    assert out.shape == (B, n_class)
    assert jnp.allclose(out, ref, atol=1e-3, rtol=1e-3), "mismatch vs reference"

    print("KERNEL_OK")
</pallas_src>

<mosaic_0001>
module attributes {stable_mosaic.version = 11 : i64} {
  func.func @_mlp_clf_kernel(%arg0: i32, %arg1: i32, %arg2: memref<8x2x32xbf16, #tpu.memory_space<vmem>>, %arg3: memref<32x16xbf16, #tpu.memory_space<vmem>>, %arg4: memref<1x16xf32, #tpu.memory_space<vmem>>, %arg5: memref<16x16xbf16, #tpu.memory_space<vmem>>, %arg6: memref<1x16xf32, #tpu.memory_space<vmem>>, %arg7: memref<8x16x128xbf16, #tpu.memory_space<vmem>>, %arg8: memref<1x128xf32, #tpu.memory_space<vmem>>, %arg9: memref<2x128xf32, #tpu.memory_space<vmem>>, %arg10: memref<2x128xf32, #tpu.memory_space<vmem>>) attributes {dimension_semantics = [#tpu.dimension_semantics<parallel>, #tpu.dimension_semantics<arbitrary>], iteration_bounds = array<i64: 1, 1>, scalar_prefetch = 0 : i64, scratch_operands = 1 : i64, tpu.core_type = #tpu.core_type<tc>, window_params = [{transform_indices = @transform_0, window_bounds = array<i64: 8, 2, 32>}, {pipeline_mode = #tpu.pipeline_mode<synchronous>, transform_indices = @transform_1, window_bounds = array<i64: 32, 16>}, {pipeline_mode = #tpu.pipeline_mode<synchronous>, transform_indices = @transform_2, window_bounds = array<i64: 1, 16>}, {pipeline_mode = #tpu.pipeline_mode<synchronous>, transform_indices = @transform_3, window_bounds = array<i64: 16, 16>}, {pipeline_mode = #tpu.pipeline_mode<synchronous>, transform_indices = @transform_4, window_bounds = array<i64: 1, 16>}, {transform_indices = @transform_5, window_bounds = array<i64: 8, 16, 128>}, {pipeline_mode = #tpu.pipeline_mode<synchronous>, transform_indices = @transform_6, window_bounds = array<i64: 1, 128>}, {transform_indices = @transform_7, window_bounds = array<i64: 2, 128>}]} {
    %c0_i32 = arith.constant 0 : i32
    %0 = arith.cmpi eq, %arg1, %c0_i32 : i32
    %1 = arith.extui %0 : i1 to i32
    %c0_i32_0 = arith.constant 0 : i32
    %2 = arith.cmpi ne, %1, %c0_i32_0 : i32
    scf.if %2 {
      %cst_94 = arith.constant 0.000000e+00 : f32
      %156 = vector.broadcast %cst_94 : f32 to vector<2x128xf32>
      %c0_95 = arith.constant 0 : index
      %c0_96 = arith.constant 0 : index
      %157 = vector.load %arg10[%c0_95, %c0_96] : memref<2x128xf32, #tpu.memory_space<vmem>>, vector<2x128xf32>
      tpu.vector_store %arg10[%c0_95, %c0_96], %156 {strides = array<i32>} : memref<2x128xf32, #tpu.memory_space<vmem>>, vector<2x128xf32>,
    } else {
    }
    %c0 = arith.constant 0 : index
    %c0_1 = arith.constant 0 : index
    %3 = vector.load %arg3[%c0, %c0_1] : memref<32x16xbf16, #tpu.memory_space<vmem>>, vector<32x16xbf16>
    %c0_2 = arith.constant 0 : index
    %c0_3 = arith.constant 0 : index
    %4 = vector.load %arg4[%c0_2, %c0_3] : memref<1x16xf32, #tpu.memory_space<vmem>>, vector<1x16xf32>
    %c0_4 = arith.constant 0 : index
    %c0_5 = arith.constant 0 : index
    %5 = vector.load %arg5[%c0_4, %c0_5] : memref<16x16xbf16, #tpu.memory_space<vmem>>, vector<16x16xbf16>
    %c0_6 = arith.constant 0 : index
    %c0_7 = arith.constant 0 : index
    %6 = vector.load %arg6[%c0_6, %c0_7] : memref<1x16xf32, #tpu.memory_space<vmem>>, vector<1x16xf32>
    %c0_8 = arith.constant 0 : index
    %c0_9 = arith.constant 0 : index
    %7 = vector.load %arg10[%c0_8, %c0_9] : memref<2x128xf32, #tpu.memory_space<vmem>>, vector<2x128xf32>
    %c0_10 = arith.constant 0 : index
    %c0_11 = arith.constant 0 : index
    %c0_12 = arith.constant 0 : index
    %8 = vector.load %arg2[%c0_10, %c0_11, %c0_12] : memref<8x2x32xbf16, #tpu.memory_space<vmem>>, vector<1x2x32xbf16>
    %9 = vector.shape_cast %8 : vector<1x2x32xbf16> to vector<2x32xbf16>
    %cst = arith.constant dense<0.000000e+00> : vector<2x16xf32>
    %10 = tpu.matmul %9, %3, %cst {dimension_numbers = #tpu.dot_dimension_numbers<[1], [0], [0], [1], [0, 0, 1, 1], [], []>} : vector<2x32xbf16>, vector<32x16xbf16>, vector<2x16xf32> -> vector<2x16xf32>
    %11 = vector.broadcast %4 : vector<1x16xf32> to vector<2x16xf32>
    %12 = arith.addf %10, %11 : vector<2x16xf32>
    %cst_13 = arith.constant 0.000000e+00 : f32
    %13 = vector.broadcast %cst_13 : f32 to vector<2x16xf32>
    %14 = arith.maximumf %12, %13 : vector<2x16xf32>
    %15 = arith.truncf %14 : vector<2x16xf32> to vector<2x16xbf16>
    %cst_14 = arith.constant dense<0.000000e+00> : vector<2x16xf32>
    %16 = tpu.matmul %15, %5, %cst_14 {dimension_numbers = #tpu.dot_dimension_numbers<[1], [0], [0], [1], [0, 0, 1, 1], [], []>} : vector<2x16xbf16>, vector<16x16xbf16>, vector<2x16xf32> -> vector<2x16xf32>
    %17 = vector.broadcast %6 : vector<1x16xf32> to vector<2x16xf32>
    %18 = arith.addf %16, %17 : vector<2x16xf32>
    %cst_15 = arith.constant 0.000000e+00 : f32
    %19 = vector.broadcast %cst_15 : f32 to vector<2x16xf32>
    %20 = arith.maximumf %18, %19 : vector<2x16xf32>
    %21 = arith.truncf %20 : vector<2x16xf32> to vector<2x16xbf16>
    %c0_16 = arith.constant 0 : index
    %c0_17 = arith.constant 0 : index
    %c0_18 = arith.constant 0 : index
    %22 = vector.load %arg7[%c0_16, %c0_17, %c0_18] : memref<8x16x128xbf16, #tpu.memory_space<vmem>>, vector<1x16x128xbf16>
    %23 = vector.shape_cast %22 : vector<1x16x128xbf16> to vector<16x128xbf16>
    %cst_19 = arith.constant dense<0.000000e+00> : vector<2x128xf32>
    %24 = tpu.matmul %21, %23, %cst_19 {dimension_numbers = #tpu.dot_dimension_numbers<[1], [0], [0], [1], [0, 0, 1, 1], [], []>} : vector<2x16xbf16>, vector<16x128xbf16>, vector<2x128xf32> -> vector<2x128xf32>
    %25 = arith.addf %7, %24 : vector<2x128xf32>
    %c1 = arith.constant 1 : index
    %c0_20 = arith.constant 0 : index
    %c0_21 = arith.constant 0 : index
    %26 = vector.load %arg2[%c1, %c0_20, %c0_21] : memref<8x2x32xbf16, #tpu.memory_space<vmem>>, vector<1x2x32xbf16>
    %27 = vector.shape_cast %26 : vector<1x2x32xbf16> to vector<2x32xbf16>
    %cst_22 = arith.constant dense<0.000000e+00> : vector<2x16xf32>
    %28 = tpu.matmul %27, %3, %cst_22 {dimension_numbers = #tpu.dot_dimension_numbers<[1], [0], [0], [1], [0, 0, 1, 1], [], []>} : vector<2x32xbf16>, vector<32x16xbf16>, vector<2x16xf32> -> vector<2x16xf32>
    %29 = vector.broadcast %4 : vector<1x16xf32> to vector<2x16xf32>
    %30 = arith.addf %28, %29 : vector<2x16xf32>
    %cst_23 = arith.constant 0.000000e+00 : f32
    %31 = vector.broadcast %cst_23 : f32 to vector<2x16xf32>
    %32 = arith.maximumf %30, %31 : vector<2x16xf32>
    %33 = arith.truncf %32 : vector<2x16xf32> to vector<2x16xbf16>
    %cst_24 = arith.constant dense<0.000000e+00> : vector<2x16xf32>
    %34 = tpu.matmul %33, %5, %cst_24 {dimension_numbers = #tpu.dot_dimension_numbers<[1], [0], [0], [1], [0, 0, 1, 1], [], []>} : vector<2x16xbf16>, vector<16x16xbf16>, vector<2x16xf32> -> vector<2x16xf32>
    %35 = vector.broadcast %6 : vector<1x16xf32> to vector<2x16xf32>
    %36 = arith.addf %34, %35 : vector<2x16xf32>
    %cst_25 = arith.constant 0.000000e+00 : f32
    %37 = vector.broadcast %cst_25 : f32 to vector<2x16xf32>
    %38 = arith.maximumf %36, %37 : vector<2x16xf32>
    %39 = arith.truncf %38 : vector<2x16xf32> to vector<2x16xbf16>
    %c1_26 = arith.constant 1 : index
    %c0_27 = arith.constant 0 : index
    %c0_28 = arith.constant 0 : index
    %40 = vector.load %arg7[%c1_26, %c0_27, %c0_28] : memref<8x16x128xbf16, #tpu.memory_space<vmem>>, vector<1x16x128xbf16>
    %41 = vector.shape_cast %40 : vector<1x16x128xbf16> to vector<16x128xbf16>
    %cst_29 = arith.constant dense<0.000000e+00> : vector<2x128xf32>
    %42 = tpu.matmul %39, %41, %cst_29 {dimension_numbers = #tpu.dot_dimension_numbers<[1], [0], [0], [1], [0, 0, 1, 1], [], []>} : vector<2x16xbf16>, vector<16x128xbf16>, vector<2x128xf32> -> vector<2x128xf32>
    %43 = arith.addf %25, %42 : vector<2x128xf32>
    %c2 = arith.constant 2 : index
    %c0_30 = arith.constant 0 : index
    %c0_31 = arith.constant 0 : index
    %44 = vector.load %arg2[%c2, %c0_30, %c0_31] : memref<8x2x32xbf16, #tpu.memory_space<vmem>>, vector<1x2x32xbf16>
    %45 = vector.shape_cast %44 : vector<1x2x32xbf16> to vector<2x32xbf16>
    %cst_32 = arith.constant dense<0.000000e+00> : vector<2x16xf32>
    %46 = tpu.matmul %45, %3, %cst_32 {dimension_numbers = #tpu.dot_dimension_numbers<[1], [0], [0], [1], [0, 0, 1, 1], [], []>} : vector<2x32xbf16>, vector<32x16xbf16>, vector<2x16xf32> -> vector<2x16xf32>
    %47 = vector.broadcast %4 : vector<1x16xf32> to vector<2x16xf32>
    %48 = arith.addf %46, %47 : vector<2x16xf32>
    %cst_33 = arith.constant 0.000000e+00 : f32
    %49 = vector.broadcast %cst_33 : f32 to vector<2x16xf32>
    %50 = arith.maximumf %48, %49 : vector<2x16xf32>
    %51 = arith.truncf %50 : vector<2x16xf32> to vector<2x16xbf16>
    %cst_34 = arith.constant dense<0.000000e+00> : vector<2x16xf32>
    %52 = tpu.matmul %51, %5, %cst_34 {dimension_numbers = #tpu.dot_dimension_numbers<[1], [0], [0], [1], [0, 0, 1, 1], [], []>} : vector<2x16xbf16>, vector<16x16xbf16>, vector<2x16xf32> -> vector<2x16xf32>
    %53 = vector.broadcast %6 : vector<1x16xf32> to vector<2x16xf32>
    %54 = arith.addf %52, %53 : vector<2x16xf32>
    %cst_35 = arith.constant 0.000000e+00 : f32
    %55 = vector.broadcast %cst_35 : f32 to vector<2x16xf32>
    %56 = arith.maximumf %54, %55 : vector<2x16xf32>
    %57 = arith.truncf %56 : vector<2x16xf32> to vector<2x16xbf16>
    %c2_36 = arith.constant 2 : index
    %c0_37 = arith.constant 0 : index
    %c0_38 = arith.constant 0 : index
    %58 = vector.load %arg7[%c2_36, %c0_37, %c0_38] : memref<8x16x128xbf16, #tpu.memory_space<vmem>>, vector<1x16x128xbf16>
    %59 = vector.shape_cast %58 : vector<1x16x128xbf16> to vector<16x128xbf16>
    %cst_39 = arith.constant dense<0.000000e+00> : vector<2x128xf32>
    %60 = tpu.matmul %57, %59, %cst_39 {dimension_numbers = #tpu.dot_dimension_numbers<[1], [0], [0], [1], [0, 0, 1, 1], [], []>} : vector<2x16xbf16>, vector<16x128xbf16>, vector<2x128xf32> -> vector<2x128xf32>
    %61 = arith.addf %43, %60 : vector<2x128xf32>
    %c3 = arith.constant 3 : index
    %c0_40 = arith.constant 0 : index
    %c0_41 = arith.constant 0 : index
    %62 = vector.load %arg2[%c3, %c0_40, %c0_41] : memref<8x2x32xbf16, #tpu.memory_space<vmem>>, vector<1x2x32xbf16>
    %63 = vector.shape_cast %62 : vector<1x2x32xbf16> to vector<2x32xbf16>
    %cst_42 = arith.constant dense<0.000000e+00> : vector<2x16xf32>
    %64 = tpu.matmul %63, %3, %cst_42 {dimension_numbers = #tpu.dot_dimension_numbers<[1], [0], [0], [1], [0, 0, 1, 1], [], []>} : vector<2x32xbf16>, vector<32x16xbf16>, vector<2x16xf32> -> vector<2x16xf32>
    %65 = vector.broadcast %4 : vector<1x16xf32> to vector<2x16xf32>
    %66 = arith.addf %64, %65 : vector<2x16xf32>
    %cst_43 = arith.constant 0.000000e+00 : f32
    %67 = vector.broadcast %cst_43 : f32 to vector<2x16xf32>
    %68 = arith.maximumf %66, %67 : vector<2x16xf32>
    %69 = arith.truncf %68 : vector<2x16xf32> to vector<2x16xbf16>
    %cst_44 = arith.constant dense<0.000000e+00> : vector<2x16xf32>
    %70 = tpu.matmul %69, %5, %cst_44 {dimension_numbers = #tpu.dot_dimension_numbers<[1], [0], [0], [1], [0, 0, 1, 1], [], []>} : vector<2x16xbf16>, vector<16x16xbf16>, vector<2x16xf32> -> vector<2x16xf32>
    %71 = vector.broadcast %6 : vector<1x16xf32> to vector<2x16xf32>
    %72 = arith.addf %70, %71 : vector<2x16xf32>
    %cst_45 = arith.constant 0.000000e+00 : f32
    %73 = vector.broadcast %cst_45 : f32 to vector<2x16xf32>
    %74 = arith.maximumf %72, %73 : vector<2x16xf32>
    %75 = arith.truncf %74 : vector<2x16xf32> to vector<2x16xbf16>
    %c3_46 = arith.constant 3 : index
    %c0_47 = arith.constant 0 : index
    %c0_48 = arith.constant 0 : index
    %76 = vector.load %arg7[%c3_46, %c0_47, %c0_48] : memref<8x16x128xbf16, #tpu.memory_space<vmem>>, vector<1x16x128xbf16>
    %77 = vector.shape_cast %76 : vector<1x16x128xbf16> to vector<16x128xbf16>
    %cst_49 = arith.constant dense<0.000000e+00> : vector<2x128xf32>
    %78 = tpu.matmul %75, %77, %cst_49 {dimension_numbers = #tpu.dot_dimension_numbers<[1], [0], [0], [1], [0, 0, 1, 1], [], []>} : vector<2x16xbf16>, vector<16x128xbf16>, vector<2x128xf32> -> vector<2x128xf32>
    %79 = arith.addf %61, %78 : vector<2x128xf32>
    %c4 = arith.constant 4 : index
    %c0_50 = arith.constant 0 : index
    %c0_51 = arith.constant 0 : index
    %80 = vector.load %arg2[%c4, %c0_50, %c0_51] : memref<8x2x32xbf16, #tpu.memory_space<vmem>>, vector<1x2x32xbf16>
    %81 = vector.shape_cast %80 : vector<1x2x32xbf16> to vector<2x32xbf16>
    %cst_52 = arith.constant dense<0.000000e+00> : vector<2x16xf32>
    %82 = tpu.matmul %81, %3, %cst_52 {dimension_numbers = #tpu.dot_dimension_numbers<[1], [0], [0], [1], [0, 0, 1, 1], [], []>} : vector<2x32xbf16>, vector<32x16xbf16>, vector<2x16xf32> -> vector<2x16xf32>
    %83 = vector.broadcast %4 : vector<1x16xf32> to vector<2x16xf32>
    %84 = arith.addf %82, %83 : vector<2x16xf32>
    %cst_53 = arith.constant 0.000000e+00 : f32
    %85 = vector.broadcast %cst_53 : f32 to vector<2x16xf32>
    %86 = arith.maximumf %84, %85 : vector<2x16xf32>
    %87 = arith.truncf %86 : vector<2x16xf32> to vector<2x16xbf16>
    %cst_54 = arith.constant dense<0.000000e+00> : vector<2x16xf32>
    %88 = tpu.matmul %87, %5, %cst_54 {dimension_numbers = #tpu.dot_dimension_numbers<[1], [0], [0], [1], [0, 0, 1, 1], [], []>} : vector<2x16xbf16>, vector<16x16xbf16>, vector<2x16xf32> -> vector<2x16xf32>
    %89 = vector.broadcast %6 : vector<1x16xf32> to vector<2x16xf32>
    %90 = arith.addf %88, %89 : vector<2x16xf32>
    %cst_55 = arith.constant 0.000000e+00 : f32
    %91 = vector.broadcast %cst_55 : f32 to vector<2x16xf32>
    %92 = arith.maximumf %90, %91 : vector<2x16xf32>
    %93 = arith.truncf %92 : vector<2x16xf32> to vector<2x16xbf16>
    %c4_56 = arith.constant 4 : index
    %c0_57 = arith.constant 0 : index
    %c0_58 = arith.constant 0 : index
    %94 = vector.load %arg7[%c4_56, %c0_57, %c0_58] : memref<8x16x128xbf16, #tpu.memory_space<vmem>>, vector<1x16x128xbf16>
    %95 = vector.shape_cast %94 : vector<1x16x128xbf16> to vector<16x128xbf16>
    %cst_59 = arith.constant dense<0.000000e+00> : vector<2x128xf32>
    %96 = tpu.matmul %93, %95, %cst_59 {dimension_numbers = #tpu.dot_dimension_numbers<[1], [0], [0], [1], [0, 0, 1, 1], [], []>} : vector<2x16xbf16>, vector<16x128xbf16>, vector<2x128xf32> -> vector<2x128xf32>
    %97 = arith.addf %79, %96 : vector<2x128xf32>
    %c5 = arith.constant 5 : index
    %c0_60 = arith.constant 0 : index
    %c0_61 = arith.constant 0 : index
    %98 = vector.load %arg2[%c5, %c0_60, %c0_61] : memref<8x2x32xbf16, #tpu.memory_space<vmem>>, vector<1x2x32xbf16>
    %99 = vector.shape_cast %98 : vector<1x2x32xbf16> to vector<2x32xbf16>
    %cst_62 = arith.constant dense<0.000000e+00> : vector<2x16xf32>
    %100 = tpu.matmul %99, %3, %cst_62 {dimension_numbers = #tpu.dot_dimension_numbers<[1], [0], [0], [1], [0, 0, 1, 1], [], []>} : vector<2x32xbf16>, vector<32x16xbf16>, vector<2x16xf32> -> vector<2x16xf32>
    %101 = vector.broadcast %4 : vector<1x16xf32> to vector<2x16xf32>
    %102 = arith.addf %100, %101 : vector<2x16xf32>
    %cst_63 = arith.constant 0.000000e+00 : f32
    %103 = vector.broadcast %cst_63 : f32 to vector<2x16xf32>
    %104 = arith.maximumf %102, %103 : vector<2x16xf32>
    %105 = arith.truncf %104 : vector<2x16xf32> to vector<2x16xbf16>
    %cst_64 = arith.constant dense<0.000000e+00> : vector<2x16xf32>
    %106 = tpu.matmul %105, %5, %cst_64 {dimension_numbers = #tpu.dot_dimension_numbers<[1], [0], [0], [1], [0, 0, 1, 1], [], []>} : vector<2x16xbf16>, vector<16x16xbf16>, vector<2x16xf32> -> vector<2x16xf32>
    %107 = vector.broadcast %6 : vector<1x16xf32> to vector<2x16xf32>
    %108 = arith.addf %106, %107 : vector<2x16xf32>
    %cst_65 = arith.constant 0.000000e+00 : f32
    %109 = vector.broadcast %cst_65 : f32 to vector<2x16xf32>
    %110 = arith.maximumf %108, %109 : vector<2x16xf32>
    %111 = arith.truncf %110 : vector<2x16xf32> to vector<2x16xbf16>
    %c5_66 = arith.constant 5 : index
    %c0_67 = arith.constant 0 : index
    %c0_68 = arith.constant 0 : index
    %112 = vector.load %arg7[%c5_66, %c0_67, %c0_68] : memref<8x16x128xbf16, #tpu.memory_space<vmem>>, vector<1x16x128xbf16>
    %113 = vector.shape_cast %112 : vector<1x16x128xbf16> to vector<16x128xbf16>
    %cst_69 = arith.constant dense<0.000000e+00> : vector<2x128xf32>
    %114 = tpu.matmul %111, %113, %cst_69 {dimension_numbers = #tpu.dot_dimension_numbers<[1], [0], [0], [1], [0, 0, 1, 1], [], []>} : vector<2x16xbf16>, vector<16x128xbf16>, vector<2x128xf32> -> vector<2x128xf32>
    %115 = arith.addf %97, %114 : vector<2x128xf32>
    %c6 = arith.constant 6 : index
    %c0_70 = arith.constant 0 : index
    %c0_71 = arith.constant 0 : index
    %116 = vector.load %arg2[%c6, %c0_70, %c0_71] : memref<8x2x32xbf16, #tpu.memory_space<vmem>>, vector<1x2x32xbf16>
    %117 = vector.shape_cast %116 : vector<1x2x32xbf16> to vector<2x32xbf16>
    %cst_72 = arith.constant dense<0.000000e+00> : vector<2x16xf32>
    %118 = tpu.matmul %117, %3, %cst_72 {dimension_numbers = #tpu.dot_dimension_numbers<[1], [0], [0], [1], [0, 0, 1, 1], [], []>} : vector<2x32xbf16>, vector<32x16xbf16>, vector<2x16xf32> -> vector<2x16xf32>
    %119 = vector.broadcast %4 : vector<1x16xf32> to vector<2x16xf32>
    %120 = arith.addf %118, %119 : vector<2x16xf32>
    %cst_73 = arith.constant 0.000000e+00 : f32
    %121 = vector.broadcast %cst_73 : f32 to vector<2x16xf32>
    %122 = arith.maximumf %120, %121 : vector<2x16xf32>
    %123 = arith.truncf %122 : vector<2x16xf32> to vector<2x16xbf16>
    %cst_74 = arith.constant dense<0.000000e+00> : vector<2x16xf32>
    %124 = tpu.matmul %123, %5, %cst_74 {dimension_numbers = #tpu.dot_dimension_numbers<[1], [0], [0], [1], [0, 0, 1, 1], [], []>} : vector<2x16xbf16>, vector<16x16xbf16>, vector<2x16xf32> -> vector<2x16xf32>
    %125 = vector.broadcast %6 : vector<1x16xf32> to vector<2x16xf32>
    %126 = arith.addf %124, %125 : vector<2x16xf32>
    %cst_75 = arith.constant 0.000000e+00 : f32
    %127 = vector.broadcast %cst_75 : f32 to vector<2x16xf32>
    %128 = arith.maximumf %126, %127 : vector<2x16xf32>
    %129 = arith.truncf %128 : vector<2x16xf32> to vector<2x16xbf16>
    %c6_76 = arith.constant 6 : index
    %c0_77 = arith.constant 0 : index
    %c0_78 = arith.constant 0 : index
    %130 = vector.load %arg7[%c6_76, %c0_77, %c0_78] : memref<8x16x128xbf16, #tpu.memory_space<vmem>>, vector<1x16x128xbf16>
    %131 = vector.shape_cast %130 : vector<1x16x128xbf16> to vector<16x128xbf16>
    %cst_79 = arith.constant dense<0.000000e+00> : vector<2x128xf32>
    %132 = tpu.matmul %129, %131, %cst_79 {dimension_numbers = #tpu.dot_dimension_numbers<[1], [0], [0], [1], [0, 0, 1, 1], [], []>} : vector<2x16xbf16>, vector<16x128xbf16>, vector<2x128xf32> -> vector<2x128xf32>
    %133 = arith.addf %115, %132 : vector<2x128xf32>
    %c7 = arith.constant 7 : index
    %c0_80 = arith.constant 0 : index
    %c0_81 = arith.constant 0 : index
    %134 = vector.load %arg2[%c7, %c0_80, %c0_81] : memref<8x2x32xbf16, #tpu.memory_space<vmem>>, vector<1x2x32xbf16>
    %135 = vector.shape_cast %134 : vector<1x2x32xbf16> to vector<2x32xbf16>
    %cst_82 = arith.constant dense<0.000000e+00> : vector<2x16xf32>
    %136 = tpu.matmul %135, %3, %cst_82 {dimension_numbers = #tpu.dot_dimension_numbers<[1], [0], [0], [1], [0, 0, 1, 1], [], []>} : vector<2x32xbf16>, vector<32x16xbf16>, vector<2x16xf32> -> vector<2x16xf32>
    %137 = vector.broadcast %4 : vector<1x16xf32> to vector<2x16xf32>
    %138 = arith.addf %136, %137 : vector<2x16xf32>
    %cst_83 = arith.constant 0.000000e+00 : f32
    %139 = vector.broadcast %cst_83 : f32 to vector<2x16xf32>
    %140 = arith.maximumf %138, %139 : vector<2x16xf32>
    %141 = arith.truncf %140 : vector<2x16xf32> to vector<2x16xbf16>
    %cst_84 = arith.constant dense<0.000000e+00> : vector<2x16xf32>
    %142 = tpu.matmul %141, %5, %cst_84 {dimension_numbers = #tpu.dot_dimension_numbers<[1], [0], [0], [1], [0, 0, 1, 1], [], []>} : vector<2x16xbf16>, vector<16x16xbf16>, vector<2x16xf32> -> vector<2x16xf32>
    %143 = vector.broadcast %6 : vector<1x16xf32> to vector<2x16xf32>
    %144 = arith.addf %142, %143 : vector<2x16xf32>
    %cst_85 = arith.constant 0.000000e+00 : f32
    %145 = vector.broadcast %cst_85 : f32 to vector<2x16xf32>
    %146 = arith.maximumf %144, %145 : vector<2x16xf32>
    %147 = arith.truncf %146 : vector<2x16xf32> to vector<2x16xbf16>
    %c7_86 = arith.constant 7 : index
    %c0_87 = arith.constant 0 : index
    %c0_88 = arith.constant 0 : index
    %148 = vector.load %arg7[%c7_86, %c0_87, %c0_88] : memref<8x16x128xbf16, #tpu.memory_space<vmem>>, vector<1x16x128xbf16>
    %149 = vector.shape_cast %148 : vector<1x16x128xbf16> to vector<16x128xbf16>
    %cst_89 = arith.constant dense<0.000000e+00> : vector<2x128xf32>
    %150 = tpu.matmul %147, %149, %cst_89 {dimension_numbers = #tpu.dot_dimension_numbers<[1], [0], [0], [1], [0, 0, 1, 1], [], []>} : vector<2x16xbf16>, vector<16x128xbf16>, vector<2x128xf32> -> vector<2x128xf32>
    %151 = arith.addf %133, %150 : vector<2x128xf32>
    %c0_90 = arith.constant 0 : index
    %c0_91 = arith.constant 0 : index
    %152 = vector.load %arg10[%c0_90, %c0_91] : memref<2x128xf32, #tpu.memory_space<vmem>>, vector<2x128xf32>
    tpu.vector_store %arg10[%c0_90, %c0_91], %151 {strides = array<i32>} : memref<2x128xf32, #tpu.memory_space<vmem>>, vector<2x128xf32>,
    %c0_i32_92 = arith.constant 0 : i32
    %153 = arith.cmpi eq, %arg1, %c0_i32_92 : i32
    %154 = arith.extui %153 : i1 to i32
    %c0_i32_93 = arith.constant 0 : i32
    %155 = arith.cmpi ne, %154, %c0_i32_93 : i32
    scf.if %155 {
      %c0_94 = arith.constant 0 : index
      %c0_95 = arith.constant 0 : index
      %156 = vector.load %arg10[%c0_94, %c0_95] : memref<2x128xf32, #tpu.memory_space<vmem>>, vector<2x128xf32>
      %c0_96 = arith.constant 0 : index
      %c0_97 = arith.constant 0 : index
      %157 = vector.load %arg8[%c0_96, %c0_97] : memref<1x128xf32, #tpu.memory_space<vmem>>, vector<1x128xf32>
      %158 = vector.broadcast %157 : vector<1x128xf32> to vector<2x128xf32>
      %159 = arith.addf %156, %158 : vector<2x128xf32>
      %c0_98 = arith.constant 0 : index
      %c0_99 = arith.constant 0 : index
      %160 = vector.load %arg9[%c0_98, %c0_99] : memref<2x128xf32, #tpu.memory_space<vmem>>, vector<2x128xf32>
      tpu.vector_store %arg9[%c0_98, %c0_99], %159 {strides = array<i32>} : memref<2x128xf32, #tpu.memory_space<vmem>>, vector<2x128xf32>,
    } else {
    }
    return
  }
  func.func @transform_0(%arg0: i32, %arg1: i32) -> (i32, i32, i32) {
    %c0_i32 = arith.constant 0 : i32
    %c0_i32_0 = arith.constant 0 : i32
    return %arg1, %arg0, %c0_i32 : i32, i32, i32
  }
  func.func @transform_1(%arg0: i32, %arg1: i32) -> (i32, i32) {
    %c0_i32 = arith.constant 0 : i32
    %c0_i32_0 = arith.constant 0 : i32
    %c0_i32_1 = arith.constant 0 : i32
    return %c0_i32, %c0_i32_0 : i32, i32
  }
  func.func @transform_2(%arg0: i32, %arg1: i32) -> (i32, i32) {
    %c0_i32 = arith.constant 0 : i32
    %c0_i32_0 = arith.constant 0 : i32
    %c0_i32_1 = arith.constant 0 : i32
    return %c0_i32, %c0_i32_0 : i32, i32
  }
  func.func @transform_3(%arg0: i32, %arg1: i32) -> (i32, i32) {
    %c0_i32 = arith.constant 0 : i32
    %c0_i32_0 = arith.constant 0 : i32
    %c0_i32_1 = arith.constant 0 : i32
    return %c0_i32, %c0_i32_0 : i32, i32
  }
  func.func @transform_4(%arg0: i32, %arg1: i32) -> (i32, i32) {
    %c0_i32 = arith.constant 0 : i32
    %c0_i32_0 = arith.constant 0 : i32
    %c0_i32_1 = arith.constant 0 : i32
    return %c0_i32, %c0_i32_0 : i32, i32
  }
  func.func @transform_5(%arg0: i32, %arg1: i32) -> (i32, i32, i32) {
    %c0_i32 = arith.constant 0 : i32
    %c0_i32_0 = arith.constant 0 : i32
    %c0_i32_1 = arith.constant 0 : i32
    return %arg1, %c0_i32, %c0_i32_0 : i32, i32, i32
  }
  func.func @transform_6(%arg0: i32, %arg1: i32) -> (i32, i32) {
    %c0_i32 = arith.constant 0 : i32
    %c0_i32_0 = arith.constant 0 : i32
    %c0_i32_1 = arith.constant 0 : i32
    return %c0_i32, %c0_i32_0 : i32, i32
  }
  func.func @transform_7(%arg0: i32, %arg1: i32) -> (i32, i32) {
    %c0_i32 = arith.constant 0 : i32
    %c0_i32_0 = arith.constant 0 : i32
    return %arg0, %c0_i32 : i32, i32
  }
}

</mosaic_0001>

<bundles_post_ra>
// kernel: tpu_custom_call.1
= control target key start
LH: loop header
LB: loop body
LE: loop exit
PB: predicated region body
PF: predicated region fallthrough
CT: control target
= control target key end

     0   :  { %12 = vsyncpa [#allocation4], 0  ;;  %s1897_s0 = inlined_call_operand.vmem [shape: bf16[8,2,32], index: 0, kind: input, shape index: {}]   ;;  %s1898_s1 = inlined_call_operand.vmem [shape: bf16[32,16], index: 1, kind: input, shape index: {}]   ;;  %s1899_s2 = inlined_call_operand.vmem [shape: f32[1,16], index: 2, kind: input, shape index: {}]   ;;  %s1900_s3 = inlined_call_operand.vmem [shape: bf16[16,16], index: 3, kind: input, shape index: {}]   ;;  %s1901_s4 = inlined_call_operand.vmem [shape: f32[1,16], index: 4, kind: input, shape index: {}]   ;;  %s1902_s5 = inlined_call_operand.hbm [shape: bf16[8,16,128], index: 5, kind: input, shape index: {}]   ;;  %s1903_s6 = inlined_call_operand.vmem [shape: f32[1,128], index: 6, kind: input, shape index: {}]   ;;  %s1904_s7 = inlined_call_operand.hbm [shape: f32[2,128], index: 7, kind: output, shape index: {}]  }
   0x1   :  { %13 = vsyncpa [#allocation5], 0  ;;  %s1630_s24 = smov [#allocation3]   ;;  %s1582_s28 = scalar_lea.hbm %s1902_s5, 1024 }
   0x2   :  { %s29_s25 = sshll.u32 %s1630_s24, 4  ;;  %p1583_p0 = scmp.ne.s32.totalorder %s1902_s5, %s1582_s28  ;;  %s30_s25 = int_to_ptr.vmem [resolvable:$true] %s29_s25 }
   0x3   :  { %p1586_p1 = scmp.lt.u32.totalorder %s1582_s28, %s1902_s5 }
   0x5   :  { %p1588_p2 = pnand %p1586_p1, %p1583_p0 }
   0x7   :  { %1591 = shalt.err (!%p1588_p2)
}
   0x8   :  { %s1592_s10 = scalar_lea.vmem %s30_s25, 1024  ;;  %p1597_p4 = scmp.lt.s32.totalorder %s30_s25, %s30_s25 }
   0x9   :  { %p1593_p3 = scmp.ne.s32.totalorder %s30_s25, %s1592_s10  ;;  %p1598_p5 = scmp.lt.s32.totalorder %s1592_s10, %s1592_s10 }
   0xb   :  { %p1599_p6 = por %p1598_p5, %p1597_p4 }
   0xd   :  { %p1600_p7 = pnand %p1599_p6, %p1593_p3 }
   0xf   :  { %1603 = shalt.err (!%p1600_p7)
}
  0x10   :  { %s1631_s11 = smov 64   ;;  %s1632_s12 = smov 4  }
  0x11   :  { %35 = dma.hbm_to_vmem [thread:$0]  %s1902_s5, 1024, %s30_s25, [#allocation4], %s1631_s11, %s1631_s11, %s1632_s12  }
  0x12   :  { %1626 = dma.done.wait [#allocation4], 1024  }
  0x13   :  { %1627 = vsyncadd [#allocation4], 4294966272  ;;  %v1633_v0 = vmov 0.0   ;;  %vm1634_vm0 = vmmov 0   ;;  %v1698_v1 = vld [vmem:[%s1898_s1] sm:$0xff]   ;;  %v1704_v2 = vld [vmem:[%s1898_s1 + $0x8] sm:$0xff]  }
  0x14   :  { %1376 = vmatprep.subr.bf16.mxu0 %v1633_v0  ;;  %46 = vst [vmem:[#allocation2] sm:$0x3] %v1633_v0  ;;  %1380 = vmatprep.mubr.msk.bf16.mxu0 %vm1634_vm0, %v1633_v0  ;;  %vm75_vm1 = vcmask 261120   ;;  %v56_v3 = vld [vmem:[%s1897_s0] sm:$0x1]  ;;  %vm133_vm2 = vcmask 130048  }
  0x15   :  { %1390 = vmatprep.subr.bf16.mxu1 %v1633_v0  ;;  %1392 = vmatprep.mubr.msk.bf16.mxu1 %vm1634_vm0, %v1633_v0  ;;  %v1713_v4 = vld [vmem:[%s1900_s3] sm:$0xff]   ;;  %v1575_v30 = vld [vmem:[#allocation3 + $0x8] sm:$0xff]   ;;  %v1576_v47 = vld [vmem:[#allocation3 + $0x10] sm:$0xff]   ;;  %s1635_s14 = smov [#allocation6]  }
  0x16   :  { %1377 = vmatpush3.bf16.msra.mxu0 %v1698_v1  ;;  %v1725_v5 = vld [vmem:[%s1899_s2] ss:$0 sm:$0xff]  ;;  %v1284_v13 = vld [vmem:[%s1897_s0 + $0x1] sm:$0x1]  ;;  %v1289_v14 = vld [vmem:[%s1897_s0 + $0x2] sm:$0x1] }
  0x17   :  { %1378 = vmatprep.subr.bf16.mxu0 %v1633_v0  ;;  %v1574_v15 = vld [vmem:[#allocation3] sm:$0xff]   ;;  %v1757_v16 = vld [vmem:[%s1901_s4] ss:$0 sm:$0xff]  ;;  %s1266_s15 = sshll.u32 %s1635_s14, 4  ;;  %s1267_s15 = int_to_ptr.vmem [resolvable:$true] %s1266_s15 }
  0x18   :  { %1391 = vmatpush3.bf16.msra.mxu1 %v1574_v15  ;;  %v1294_v39 = vld [vmem:[%s1897_s0 + $0x3] sm:$0x1]  ;;  %v1299_v40 = vld [vmem:[%s1897_s0 + $0x4] sm:$0x1]  ;;  %s1604_s16 = scalar_lea.vmem %s1267_s15, 32  ;;  %p1609_p9 = scmp.lt.s32.totalorder %s1267_s15, %s1267_s15 }
  0x19   :  { %1404 = vmatprep.subr.bf16.mxu1 %v1633_v0  ;;  %p1605_p8 = scmp.ne.s32.totalorder %s1267_s15, %s1604_s16  ;;  %p1610_p10 = scmp.lt.s32.totalorder %s1604_s16, %s1604_s16 }
  0x1a   :  { %1379 = vmatpush3.bf16.msra.mxu0 %v1704_v2 }
  0x1b   :  { %1384 = vmatprep.subr.bf16.mxu0 %v1633_v0  ;;  %p1611_p11 = por %p1610_p10, %p1609_p9 }
  0x1d   :  { %1381 = vmatmul.mubr.msk.bf16.vlgmr.msra.gmra.mrb[0].mxu0 %vm75_vm1, %v56_v3  ;;  %v1577_v3 = vld [vmem:[#allocation3 + $0x18] sm:$0xff]   ;;  %p1612_p12 = pnand %p1611_p11, %p1605_p8 }
  0x1e   :  { %1385 = vmatpush3.bf16.msra.mxu0 %v1713_v4  ;;  %1386 = vmatprep.mubr.msk.bf16.mxu0 %vm1634_vm0, %v1633_v0 }
  0x1f   :  { %1396 = vmatprep.subr.bf16.mxu0 %v1633_v0 }
  0xf0   :  { %v113_v6 = vpop.f32.mrb[0].mxu0 }
  0xf1   :  { %v114_v7 = vadd.f32 %v1725_v5, %v113_v6  ;;  %v1382_v8 = vpop.f32.mrb[1].mxu0 }
  0xf2   :  { %v116_v9 = vpop.f32.mrb[2].mxu0 }
  0xf3   :  { %v119_v10 = vmax.f32 %v114_v7, 0.0  ;;  %v1383_v11 = vpop.f32.mrb[3].mxu0 }
  0xf5   :  { %v120_v12 = vpack.c.bf16 %v119_v10, %v119_v10 }
  0xf7   :  { %1387 = vmatmul.mubr.msk.bf16.vlgmr.msra.gmra.mrb[4].mxu0 %vm133_vm2, %v120_v12  ;;  %v1304_v12 = vld [vmem:[%s1897_s0 + $0x5] sm:$0x1] }
  0xf8   :  { %1397 = vmatpush3.bf16.msra.mxu0 %v1698_v1  ;;  %1400 = vmatprep.mubr.msk.bf16.mxu0 %vm1634_vm0, %v1633_v0 }
  0xf9   :  { %1398 = vmatprep.subr.bf16.mxu0 %v1633_v0 }
  0xfc   :  { %1399 = vmatpush3.bf16.msra.mxu0 %v1704_v2 }
  0xfd   :  { %1416 = vmatprep.subr.bf16.mxu0 %v1633_v0 }
  0xff   :  { %1401 = vmatmul.mubr.msk.bf16.vlgmr.msra.gmra.mrb[8].mxu0 %vm75_vm1, %v1284_v13  ;;  %v1309_v13 = vld [vmem:[%s1897_s0 + $0x6] sm:$0x1] }
 0x100   :  { %1417 = vmatpush3.bf16.msra.mxu0 %v1698_v1  ;;  %1420 = vmatprep.mubr.msk.bf16.mxu0 %vm1634_vm0, %v1633_v0 }
 0x101   :  { %1418 = vmatprep.subr.bf16.mxu0 %v1633_v0 }
 0x104   :  { %1419 = vmatpush3.bf16.msra.mxu0 %v1704_v2 }
 0x105   :  { %1424 = vmatprep.subr.bf16.mxu0 %v1633_v0 }
 0x107   :  { %1421 = vmatmul.mubr.msk.bf16.vlgmr.msra.gmra.mrb[12].mxu0 %vm75_vm1, %v1289_v14 }
 0x108   :  { %1425 = vmatpush3.bf16.msra.mxu0 %v1713_v4  ;;  %1426 = vmatprep.mubr.msk.bf16.mxu0 %vm1634_vm0, %v1633_v0 }
 0x109   :  { %1436 = vmatprep.subr.bf16.mxu0 %v1633_v0 }
 0x1ca   :  { %v171_v17 = vpop.f32.mrb[4].mxu0 }
 0x1cb   :  { %v172_v18 = vadd.f32 %v1757_v16, %v171_v17  ;;  %v1388_v19 = vpop.f32.mrb[5].mxu0 }
 0x1cc   :  { %v174_v20 = vpop.f32.mrb[6].mxu0 }
 0x1cd   :  { %v177_v21 = vmax.f32 %v172_v18, 0.0  ;;  %v1389_v22 = vpop.f32.mrb[7].mxu0 }
 0x1cf   :  { %v178_v23 = vpack.c.bf16 %v177_v21, %v177_v21  ;;  %v1578_v21 = vld [vmem:[#allocation3 + $0x20] sm:$0xff]  }
 0x1d1   :  { %1393 = vmatmul.mubr.msk.bf16.vlgmr.msra.gmra.mrb[0].mxu1 %vm133_vm2, %v178_v23 }
 0x1d2   :  { %1405 = vmatpush3.bf16.msra.mxu1 %v1713_v4  ;;  %v270_v24 = vpop.f32.mrb[8].mxu0  ;;  %1406 = vmatprep.mubr.msk.bf16.mxu1 %vm1634_vm0, %v1633_v0 }
 0x1d3   :  { %v271_v25 = vadd.f32 %v1725_v5, %v270_v24  ;;  %v1402_v26 = vpop.f32.mrb[9].mxu0  ;;  %1410 = vmatprep.subr.bf16.mxu1 %v1633_v0 }
 0x1d4   :  { %v273_v27 = vpop.f32.mrb[10].mxu0 }
 0x1d5   :  { %v276_v28 = vmax.f32 %v271_v25, 0.0  ;;  %v1403_v29 = vpop.f32.mrb[11].mxu0 }
 0x1d7   :  { %v277_v31 = vpack.c.bf16 %v276_v28, %v276_v28 }
 0x1d9   :  { %1407 = vmatmul.mubr.msk.bf16.vlgmr.msra.gmra.mrb[4].mxu1 %vm133_vm2, %v277_v31 }
 0x1da   :  { %v415_v32 = vpop.f32.mrb[12].mxu0  ;;  %1411 = vmatpush3.bf16.msra.mxu1 %v1575_v30  ;;  %1412 = vmatprep.mubr.msk.bf16.mxu1 %vm1634_vm0, %v1633_v0 }
 0x1db   :  { %v416_v33 = vadd.f32 %v1725_v5, %v415_v32  ;;  %v1422_v34 = vpop.f32.mrb[13].mxu0  ;;  %1430 = vmatprep.subr.bf16.mxu1 %v1633_v0 }
 0x1dc   :  { %v418_v35 = vpop.f32.mrb[14].mxu0 }
 0x1dd   :  { %v421_v36 = vmax.f32 %v416_v33, 0.0  ;;  %v1423_v37 = vpop.f32.mrb[15].mxu0 }
 0x1df   :  { %v422_v38 = vpack.c.bf16 %v421_v36, %v421_v36 }
 0x1e1   :  { %1427 = vmatmul.mubr.msk.bf16.vlgmr.msra.gmra.mrb[16].mxu0 %vm133_vm2, %v422_v38 }
 0x1e2   :  { %1437 = vmatpush3.bf16.msra.mxu0 %v1698_v1  ;;  %1440 = vmatprep.mubr.msk.bf16.mxu0 %vm1634_vm0, %v1633_v0 }
 0x1e3   :  { %1438 = vmatprep.subr.bf16.mxu0 %v1633_v0 }
 0x1e6   :  { %1439 = vmatpush3.bf16.msra.mxu0 %v1704_v2 }
 0x1e7   :  { %1456 = vmatprep.subr.bf16.mxu0 %v1633_v0 }
 0x1e9   :  { %1441 = vmatmul.mubr.msk.bf16.vlgmr.msra.gmra.mrb[20].mxu0 %vm75_vm1, %v1294_v39 }
 0x1ea   :  { %1457 = vmatpush3.bf16.msra.mxu0 %v1698_v1  ;;  %1460 = vmatprep.mubr.msk.bf16.mxu0 %vm1634_vm0, %v1633_v0 }
 0x1eb   :  { %1458 = vmatprep.subr.bf16.mxu0 %v1633_v0 }
 0x1ee   :  { %1459 = vmatpush3.bf16.msra.mxu0 %v1704_v2 }
 0x1ef   :  { %1464 = vmatprep.subr.bf16.mxu0 %v1633_v0 }
 0x1f1   :  { %1461 = vmatmul.mubr.msk.bf16.vlgmr.msra.gmra.mrb[24].mxu0 %vm75_vm1, %v1299_v40 }
 0x1f2   :  { %1465 = vmatpush3.bf16.msra.mxu0 %v1713_v4  ;;  %1466 = vmatprep.mubr.msk.bf16.mxu0 %vm1634_vm0, %v1633_v0 }
 0x1f3   :  { %1476 = vmatprep.subr.bf16.mxu0 %v1633_v0 }
 0x2ac   :  { %v315_v41 = vpop.f32.mrb[4].mxu1 }
 0x2ad   :  { %v316_v42 = vadd.f32 %v1757_v16, %v315_v41  ;;  %v1408_v43 = vpop.f32.mrb[5].mxu1 }
 0x2ae   :  { %v318_v44 = vpop.f32.mrb[6].mxu1 }
 0x2af   :  { %v321_v45 = vmax.f32 %v316_v42, 0.0  ;;  %v1409_v46 = vpop.f32.mrb[7].mxu1  ;;  %v1579_v44 = vld [vmem:[#allocation3 + $0x28] sm:$0xff]  }
 0x2b1   :  { %v322_v48 = vpack.c.bf16 %v321_v45, %v321_v45  ;;  %v1314_v45 = vld [vmem:[%s1897_s0 + $0x7] sm:$0x1] }
 0x2b3   :  { %1413 = vmatmul.mubr.msk.bf16.vlgmr.msra.gmra.mrb[0].mxu1 %vm133_vm2, %v322_v48 }
 0x2b4   :  { %1431 = vmatpush3.bf16.msra.mxu1 %v1576_v47  ;;  %v460_v49 = vpop.f32.mrb[16].mxu0  ;;  %1432 = vmatprep.mubr.msk.bf16.mxu1 %vm1634_vm0, %v1633_v0 }
 0x2b5   :  { %v461_v50 = vadd.f32 %v1757_v16, %v460_v49  ;;  %v1428_v51 = vpop.f32.mrb[17].mxu0  ;;  %1444 = vmatprep.subr.bf16.mxu1 %v1633_v0 }
 0x2b6   :  { %v463_v52 = vpop.f32.mrb[18].mxu0 }
 0x2b7   :  { %v466_v53 = vmax.f32 %v461_v50, 0.0  ;;  %v1429_v54 = vpop.f32.mrb[19].mxu0 }
 0x2b9   :  { %v467_v55 = vpack.c.bf16 %v466_v53, %v466_v53 }
 0x2bc   :  { %v560_v56 = vpop.f32.mrb[20].mxu0 }
 0x2bd   :  { %v561_v57 = vadd.f32 %v1725_v5, %v560_v56  ;;  %v1442_v58 = vpop.f32.mrb[21].mxu0 }
 0x2be   :  { %v563_v59 = vpop.f32.mrb[22].mxu0 }
 0x2bf   :  { %v566_v60 = vmax.f32 %v561_v57, 0.0  ;;  %1433 = vmatmul.mubr.msk.bf16.vlgmr.msra.gmra.mrb[0].mxu1 %vm133_vm2, %v467_v55  ;;  %v1443_v61 = vpop.f32.mrb[23].mxu0  ;;  %v1580_v55 = vld [vmem:[#allocation3 + $0x30] sm:$0xff]  }
 0x2c0   :  { %1445 = vmatpush3.bf16.msra.mxu1 %v1713_v4  ;;  %1446 = vmatprep.mubr.msk.bf16.mxu1 %vm1634_vm0, %v1633_v0 }
 0x2c1   :  { %1450 = vmatprep.subr.bf16.mxu1 %v1633_v0  ;;  %v567_v62 = vpack.c.bf16 %v566_v60, %v566_v60 }
 0x2c4   :  { %v705_v63 = vpop.f32.mrb[24].mxu0 }
 0x2c5   :  { %v706_v6 = vadd.f32 %v1725_v5, %v705_v63  ;;  %v1462_v7 = vpop.f32.mrb[25].mxu0 }
 0x2c6   :  { %v708_v8 = vpop.f32.mrb[26].mxu0  ;;  %v1581_v7 = vld [vmem:[#allocation3 + $0x38] sm:$0xff]  }
 0x2c7   :  { %1447 = vmatmul.mubr.msk.bf16.vlgmr.msra.gmra.mrb[8].mxu1 %vm133_vm2, %v567_v62  ;;  %v711_v9 = vmax.f32 %v706_v6, 0.0  ;;  %v1463_v10 = vpop.f32.mrb[27].mxu0 }
 0x2c8   :  { %1451 = vmatpush3.bf16.msra.mxu1 %v1577_v3  ;;  %1452 = vmatprep.mubr.msk.bf16.mxu1 %vm1634_vm0, %v1633_v0 }
 0x2c9   :  { %v712_v11 = vpack.c.bf16 %v711_v9, %v711_v9  ;;  %1470 = vmatprep.subr.bf16.mxu1 %v1633_v0 }
 0x2cb   :  { %1467 = vmatmul.mubr.msk.bf16.vlgmr.msra.gmra.mrb[28].mxu0 %vm133_vm2, %v712_v11 }
 0x2cc   :  { %1477 = vmatpush3.bf16.msra.mxu0 %v1698_v1  ;;  %1480 = vmatprep.mubr.msk.bf16.mxu0 %vm1634_vm0, %v1633_v0 }
 0x2cd   :  { %1478 = vmatprep.subr.bf16.mxu0 %v1633_v0 }
 0x2d0   :  { %1479 = vmatpush3.bf16.msra.mxu0 %v1704_v2 }
 0x2d1   :  { %1496 = vmatprep.subr.bf16.mxu0 %v1633_v0 }
 0x2d3   :  { %1481 = vmatmul.mubr.msk.bf16.vlgmr.msra.gmra.mrb[32].mxu0 %vm75_vm1, %v1304_v12 }
 0x2d4   :  { %1497 = vmatpush3.bf16.msra.mxu0 %v1698_v1  ;;  %1500 = vmatprep.mubr.msk.bf16.mxu0 %vm1634_vm0, %v1633_v0 }
 0x2d5   :  { %1498 = vmatprep.subr.bf16.mxu0 %v1633_v0 }
 0x2d8   :  { %1499 = vmatpush3.bf16.msra.mxu0 %v1704_v2 }
 0x2d9   :  { %1504 = vmatprep.subr.bf16.mxu0 %v1633_v0 }
 0x2db   :  { %1501 = vmatmul.mubr.msk.bf16.vlgmr.msra.gmra.mrb[36].mxu0 %vm75_vm1, %v1309_v13  ;;  %v55_v13 = vld [vmem:[#allocation2] sm:$0x3] }
 0x2dc   :  { %1505 = vmatpush3.bf16.msra.mxu0 %v1713_v4  ;;  %1506 = vmatprep.mubr.msk.bf16.mxu0 %vm1634_vm0, %v1633_v0 }
 0x2dd   :  { %1516 = vmatprep.subr.bf16.mxu0 %v1633_v0 }
 0x39a   :  { %v605_v14 = vpop.f32.mrb[8].mxu1 }
 0x39b   :  { %v606_v15 = vadd.f32 %v1757_v16, %v605_v14  ;;  %v1448_v17 = vpop.f32.mrb[9].mxu1 }
 0x39c   :  { %v608_v18 = vpop.f32.mrb[10].mxu1 }
 0x39d   :  { %v611_v19 = vmax.f32 %v606_v15, 0.0  ;;  %v1449_v20 = vpop.f32.mrb[11].mxu1 }
 0x39e   :  { %v750_v22 = vpop.f32.mrb[28].mxu0 }
 0x39f   :  { %v612_v23 = vpack.c.bf16 %v611_v19, %v611_v19  ;;  %v1468_v24 = vpop.f32.mrb[29].mxu0  ;;  %v751_v26 = vadd.f32 %v1757_v16, %v750_v22 }
 0x3a0   :  { %v753_v25 = vpop.f32.mrb[30].mxu0 }
 0x3a1   :  { %1453 = vmatmul.mubr.msk.bf16.vlgmr.msra.gmra.mrb[0].mxu1 %vm133_vm2, %v612_v23  ;;  %v1469_v27 = vpop.f32.mrb[31].mxu0  ;;  %v756_v28 = vmax.f32 %v751_v26, 0.0 }
 0x3a2   :  { %1471 = vmatpush3.bf16.msra.mxu1 %v1578_v21  ;;  %1472 = vmatprep.mubr.msk.bf16.mxu1 %vm1634_vm0, %v1633_v0 }
 0x3a3   :  { %1484 = vmatprep.subr.bf16.mxu1 %v1633_v0  ;;  %v757_v32 = vpack.c.bf16 %v756_v28, %v756_v28 }
 0x3a6   :  { %v850_v29 = vpop.f32.mrb[32].mxu0 }
 0x3a7   :  { %v1482_v30 = vpop.f32.mrb[33].mxu0  ;;  %v851_v33 = vadd.f32 %v1725_v5, %v850_v29 }
 0x3a8   :  { %v853_v31 = vpop.f32.mrb[34].mxu0 }
 0x3a9   :  { %v1483_v34 = vpop.f32.mrb[35].mxu0  ;;  %v856_v35 = vmax.f32 %v851_v33, 0.0 }
 0x3ab   :  { %v857_v40 = vpack.c.bf16 %v856_v35, %v856_v35 }
 0x3ad   :  { %1473 = vmatmul.mubr.msk.bf16.vlgmr.msra.gmra.mrb[0].mxu1 %vm133_vm2, %v757_v32 }
 0x3ae   :  { %1485 = vmatpush3.bf16.msra.mxu1 %v1713_v4  ;;  %1486 = vmatprep.mubr.msk.bf16.mxu1 %vm1634_vm0, %v1633_v0  ;;  %v995_v36 = vpop.f32.mrb[36].mxu0 }
 0x3af   :  { %v996_v37 = vadd.f32 %v1725_v5, %v995_v36  ;;  %v1502_v38 = vpop.f32.mrb[37].mxu0  ;;  %1490 = vmatprep.subr.bf16.mxu1 %v1633_v0 }
 0x3b0   :  { %v998_v39 = vpop.f32.mrb[38].mxu0 }
 0x3b1   :  { %v1001_v41 = vmax.f32 %v996_v37, 0.0  ;;  %v1503_v42 = vpop.f32.mrb[39].mxu0 }
 0x3b3   :  { %v1002_v43 = vpack.c.bf16 %v1001_v41, %v1001_v41 }
 0x3b5   :  { %1487 = vmatmul.mubr.msk.bf16.vlgmr.msra.gmra.mrb[12].mxu1 %vm133_vm2, %v857_v40  ;;  %1507 = vmatmul.mubr.msk.bf16.vlgmr.msra.gmra.mrb[40].mxu0 %vm133_vm2, %v1002_v43 }
 0x3b6   :  { %1517 = vmatpush3.bf16.msra.mxu0 %v1698_v1  ;;  %1520 = vmatprep.mubr.msk.bf16.mxu0 %vm1634_vm0, %v1633_v0 }
 0x3b7   :  { %1518 = vmatprep.subr.bf16.mxu0 %v1633_v0  ;;  %1491 = vmatpush3.bf16.msra.mxu1 %v1579_v44 }
 0x3b8   :  { %1492 = vmatprep.mubr.msk.bf16.mxu1 %vm1634_vm0, %v1633_v0  ;;  %1510 = vmatprep.subr.bf16.mxu1 %v1633_v0 }
 0x3ba   :  { %1519 = vmatpush3.bf16.msra.mxu0 %v1704_v2 }
 0x3bd   :  { %1521 = vmatmul.mubr.msk.bf16.vlgmr.msra.gmra.mrb[44].mxu0 %vm75_vm1, %v1314_v45 }
 0x488   :  { %v895_v1 = vpop.f32.mrb[12].mxu1  ;;  %v1040_v46 = vpop.f32.mrb[40].mxu0 }
 0x489   :  { %v896_v47 = vadd.f32 %v1757_v16, %v895_v1  ;;  %v1488_v48 = vpop.f32.mrb[13].mxu1  ;;  %v1508_v49 = vpop.f32.mrb[41].mxu0  ;;  %v1041_v2 = vadd.f32 %v1757_v16, %v1040_v46 }
 0x48a   :  { %v898_v50 = vpop.f32.mrb[14].mxu1  ;;  %v1043_v51 = vpop.f32.mrb[42].mxu0 }
 0x48b   :  { %v901_v52 = vmax.f32 %v896_v47, 0.0  ;;  %v1489_v53 = vpop.f32.mrb[15].mxu1  ;;  %v1509_v54 = vpop.f32.mrb[43].mxu0  ;;  %v1046_v60 = vmax.f32 %v1041_v2, 0.0 }
 0x48d   :  { %v902_v56 = vpack.c.bf16 %v901_v52, %v901_v52  ;;  %v1047_v62 = vpack.c.bf16 %v1046_v60, %v1046_v60 }
 0x48f   :  { %1493 = vmatmul.mubr.msk.bf16.vlgmr.msra.gmra.mrb[0].mxu1 %vm133_vm2, %v902_v56 }
 0x490   :  { %1511 = vmatpush3.bf16.msra.mxu1 %v1580_v55  ;;  %v1140_v57 = vpop.f32.mrb[44].mxu0  ;;  %1512 = vmatprep.mubr.msk.bf16.mxu1 %vm1634_vm0, %v1633_v0 }
 0x491   :  { %v1522_v58 = vpop.f32.mrb[45].mxu0  ;;  %1524 = vmatprep.subr.bf16.mxu1 %v1633_v0  ;;  %v1141_v63 = vadd.f32 %v1725_v5, %v1140_v57 }
 0x492   :  { %v1143_v59 = vpop.f32.mrb[46].mxu0 }
 0x493   :  { %v1523_v61 = vpop.f32.mrb[47].mxu0  ;;  %v1146_v3 = vmax.f32 %v1141_v63, 0.0 }
 0x495   :  { %v1147_v6 = vpack.c.bf16 %v1146_v3, %v1146_v3 }
 0x49b   :  { %1513 = vmatmul.mubr.msk.bf16.vlgmr.msra.gmra.mrb[0].mxu1 %vm133_vm2, %v1047_v62 }
 0x49c   :  { %1525 = vmatpush3.bf16.msra.mxu1 %v1713_v4  ;;  %1526 = vmatprep.mubr.msk.bf16.mxu1 %vm1634_vm0, %v1633_v0 }
 0x49d   :  { %1530 = vmatprep.subr.bf16.mxu1 %v1633_v0 }
 0x4a3   :  { %1527 = vmatmul.mubr.msk.bf16.vlgmr.msra.gmra.mrb[16].mxu1 %vm133_vm2, %v1147_v6 }
 0x4a4   :  { %1531 = vmatpush3.bf16.msra.mxu1 %v1581_v7  ;;  %1532 = vmatprep.mubr.msk.bf16.mxu1 %vm1634_vm0, %v1633_v0  ;;  %v1319_v0 = vld [vmem:[%s1903_s6] ss:$0 sm:$0xff] }
 0x576   :  { %v1185_v8 = vpop.f32.mrb[16].mxu1 }
 0x577   :  { %v1186_v5 = vadd.f32 %v1757_v16, %v1185_v8  ;;  %v1528_v9 = vpop.f32.mrb[17].mxu1 }
 0x578   :  { %v1188_v10 = vpop.f32.mrb[18].mxu1 }
 0x579   :  { %v1191_v11 = vmax.f32 %v1186_v5, 0.0  ;;  %v1529_v4 = vpop.f32.mrb[19].mxu1 }
 0x57b   :  { %v1192_v12 = vpack.c.bf16 %v1191_v11, %v1191_v11 }
 0x57d   :  { %1533 = vmatmul.mubr.msk.bf16.vlgmr.msra.gmra.mrb[0].mxu1 %vm133_vm2, %v1192_v12 }
 0x650   :  { %v1239_v14 = vpop.f32.mrb[0].mxu1 }
 0x651   :  { %v1536_v15 = vadd.f32 %v1239_v14, %v55_v13  ;;  %v1534_v17 = vpop.f32.mrb[1].mxu1 }
 0x652   :  { %v1242_v18 = vpop.f32.mrb[2].mxu1 }
 0x653   :  { %1246 = vst [vmem:[#allocation2] sm:$0x3] %v1536_v15  ;;  %v1535_v19 = vpop.f32.mrb[3].mxu1 }
 0x65a   :  { %v1250_v16 = vld [vmem:[#allocation2] sm:$0x3] }
 0x65b   :  { %v1258_v20 = vadd.f32 %v1319_v0, %v1250_v16 }
 0x65d   :  { %1259 = vst [vmem:[#allocation6] sm:$0x3] %v1258_v20 }
 0x65e   :  { %1615 = shalt.err (!%p1612_p12)
}
 0x65f   :  { %s1616_s18 = scalar_lea.hbm %s1904_s7, 32 }
 0x660   :  { %p1617_p13 = scmp.ne.s32.totalorder %s1904_s7, %s1616_s18  ;;  %p1620_p0 = scmp.lt.u32.totalorder %s1616_s18, %s1904_s7 }
 0x662   :  { %p1622_p1 = pnand %p1620_p0, %p1617_p13 }
 0x664   :  { %1625 = shalt.err (!%p1622_p1)
}
 0x665   :  { %1269 = dma.vmem_to_hbm [thread:$0]  %s1267_s15, 32, %s1904_s7, [#allocation5]  }
 0x666   :  { %1628 = dma.done.wait [#allocation5], 32  }
 0x667   :  { %1629 = vsyncadd [#allocation5], 4294967264 }
 0x668   :  { %1273 = vsyncpa [#allocation4], 1 }
 0x669   :  { %1274 = vsyncpa [#allocation5], 1 }

</bundles_post_ra>
